<compile_context>
chip_gen: v5e
topology: v5e:2x2
jax: 0.10.0
libtpu: 0.0.40
codegen_flags: <defaults>
</compile_context>

<pallas_src>
import math
import numpy as np
import jax
import jax.numpy as jnp
from jax.experimental import pallas as pl
from jax.experimental.pallas import tpu as pltpu

LANE = 128


# ----------------------------- Pallas kernel --------------------------------
def make_lmu_model_kernel(T, Tp, D, Hd):
    # Static column offsets into the packed small-parameter slab [rows, 128].
    C_WHX = 0          # cols [0, D):   W_hx = W_h.weight[:, K:]   ([Hd, D])
    C_BH = D           # col D:         b_h                        ([Hd])
    C_WL = D + 1       # col D+1:       linear.weight              ([Hd])
    C_WU = D + 2       # col D+2:       W_u.weight (rows 0..D-1)   ([D])
    C_SC = D + 3       # col D+3:       row0 = b_u, row1 = b_l

    def kernel(xt_ref, gt_ref, slab_ref, out_ref):
        # xt_ref: [D, Tp]   gt_ref: [Hd, Tp]   slab_ref: [R, 128]   out_ref: [1, 1]
        xt = xt_ref[...]                                        # [D, Tp]

        # u = ReLU(x @ W_u^T + b_u), computed as a lane-dense row [1, Tp]
        # (VPU multiply with lane-broadcast weight column + 8-sublane reduce).
        w_u = slab_ref[0:D, C_WU:C_WU + 1]                      # [D, 1]
        b_u = slab_ref[0:1, C_SC:C_SC + 1]                      # [1, 1]
        u = jnp.maximum(jnp.sum(xt * w_u, axis=0, keepdims=True) + b_u, 0.0)
        # Padded lanes t >= T: xt is 0 there, so u = relu(b_u) which may be
        # nonzero, but G^T is zero-padded on those lanes -> no contribution.

        # Folded memory term: h_m[j] = sum_t u[t] * G^T[j, t]   -> [Hd, 1]
        # (VPU multiply with sublane-broadcast u + lane reduce; MXU not needed.)
        h = jnp.sum(gt_ref[...] * u, axis=1, keepdims=True)     # [Hd, 1]

        # Last-timestep input term: h_x = W_hx @ x[T-1, :], unrolled over D
        # (static [1,1] slices of x^T, pure VPU broadcast multiply-adds).
        for d in range(D):
            h = h + slab_ref[0:Hd, C_WHX + d:C_WHX + d + 1] * xt_ref[d:d + 1, T - 1:T]

        # h_n = ReLU(h_m + h_x + b_h)                           -> [Hd, 1]
        h = jnp.maximum(h + slab_ref[0:Hd, C_BH:C_BH + 1], 0.0)

        # logit = h_n @ linear.weight^T + b_l                   -> [1, 1]
        logit = (jnp.sum(h * slab_ref[0:Hd, C_WL:C_WL + 1], axis=0, keepdims=True)
                 + slab_ref[1:2, C_SC:C_SC + 1])

        # Numerically-stable sigmoid (exp argument is always <= 0).
        ez = jnp.exp(-jnp.abs(logit))
        out_ref[...] = jnp.where(logit >= 0.0, 1.0 / (1.0 + ez), ez / (1.0 + ez))

    return kernel


def model_forward_pallas(x, kp):
    """x: [1, T, D] float32; kp: dict of packed kernel constants."""
    B, T, D = x.shape
    assert B == 1, "Model.forward ends with .view(1); batch must be 1."
    assert T == kp["T"] and D == kp["D"]
    Tp, Hd = kp["Tp"], kp["Hd"]

    # Layout plumbing only: present the sequence axis lane-dense to the kernel.
    xt = jnp.swapaxes(x[0], 0, 1).astype(jnp.float32)           # [D, T]
    if Tp != T:
        xt = jnp.pad(xt, ((0, 0), (0, Tp - T)))                 # [D, Tp]

    kernel = make_lmu_model_kernel(T, Tp, D, Hd)
    vmem = pl.BlockSpec(memory_space=pltpu.MemorySpace.VMEM)
    out = pl.pallas_call(
        kernel,
        out_shape=jax.ShapeDtypeStruct((1, 1), jnp.float32),
        in_specs=[vmem, vmem, vmem],
        out_specs=vmem,
    )(xt, kp["gt"], kp["slab"])
    return out.reshape(1)


# --------------------- parameter / buffer construction ----------------------
def _expm_np(M):
    """float64 matrix exponential (scaling & squaring + Taylor). No scipy dep."""
    M = np.asarray(M, dtype=np.float64)
    n = M.shape[0]
    nrm = float(np.linalg.norm(M, 1))
    s = max(0, int(np.ceil(np.log2(max(nrm, 1e-30)))) + 1)
    A = M / (2.0 ** s)
    E = np.eye(n)
    term = np.eye(n)
    for k in range(1, 26):
        term = term @ A / k
        E = E + term
    for _ in range(s):
        E = E @ E
    return E


def state_space_matrices_np(memory_size, theta):
    """LMU continuous A, B then zoh discretization (cont2discrete, dt=1)."""
    K = memory_size
    Q = np.arange(K, dtype=np.float64).reshape(-1, 1)
    R = (2 * Q + 1) / theta
    i, j = np.meshgrid(np.arange(K), np.arange(K), indexing="ij")
    A = R * np.where(i < j, -1.0, (-1.0) ** (i - j + 1))
    B = R * (-1.0) ** Q
    em = np.zeros((K + 1, K + 1), dtype=np.float64)
    em[:K, :K] = A
    em[:K, K:K + 1] = B
    M = _expm_np(em)                       # zoh: expm([[A,B],[0,0]] * dt)
    return M[:K, :K], M[:K, K:K + 1]


def impulse_H_np(Ad, Bd, seq_len):
    K = Ad.shape[0]
    H = np.zeros((K, seq_len), dtype=np.float64)
    A_i = np.eye(K)
    for t in range(seq_len):
        H[:, t] = (A_i @ Bd)[:, 0]
        A_i = Ad @ A_i
    return H                               # [K, T]


def build_params(key, input_size, hidden_size, memory_size, seq_len, theta):
    D, Hd, K, T = input_size, hidden_size, memory_size, seq_len
    assert D + 4 <= LANE, "small-parameter slab needs D + 4 <= 128 columns"
    ks = jax.random.split(key, 6)

    def uinit(k, shape, fan_in):
        b = 1.0 / math.sqrt(fan_in)
        return jax.random.uniform(k, shape, jnp.float32, minval=-b, maxval=b)

    # PyTorch-layout params (used by the float64 numpy reference).
    w_u = np.asarray(uinit(ks[0], (1, D), D))          # W_u.weight
    b_u = np.asarray(uinit(ks[1], (1,), D))            # W_u.bias
    W_h = np.asarray(uinit(ks[2], (Hd, K + D), K + D)) # W_h.weight
    b_h = np.asarray(uinit(ks[3], (Hd,), K + D))       # W_h.bias
    w_l = np.asarray(uinit(ks[4], (1, Hd), Hd))        # linear.weight
    b_l = np.asarray(uinit(ks[5], (1,), Hd))           # linear.bias

    Ad, Bd = state_space_matrices_np(K, theta)
    H = impulse_H_np(Ad, Bd, T)                        # [K, T] float64

    ref_params = dict(w_u=w_u.astype(np.float64), b_u=b_u.astype(np.float64),
                      W_h=W_h.astype(np.float64), b_h=b_h.astype(np.float64),
                      w_l=w_l.astype(np.float64), b_l=b_l.astype(np.float64),
                      H=H)

    # ---- packed, lane-dense kernel constants -------------------------------
    # Constant fold of the memory path:  G^T = W_hm @ reversed(H)   ([Hd, T]).
    W_hm = W_h.astype(np.float64)[:, :K]
    GT = (W_hm @ H[:, ::-1]).astype(np.float32)        # [Hd, T], lane-dense in T
    Tp = ((T + LANE - 1) // LANE) * LANE
    gt = np.zeros((Hd, Tp), np.float32)
    gt[:, :T] = GT                                     # zero-pad lanes T..Tp

    # Small-parameter slab [rows, 128] (single DMA, static column slices).
    n_rows = ((max(Hd, D, 2) + 7) // 8) * 8
    slab = np.zeros((n_rows, LANE), np.float32)
    slab[:Hd, 0:D] = W_h[:, K:]                        # W_hx   (cols 0..D-1)
    slab[:Hd, D] = b_h                                 # b_h    (col D)
    slab[:Hd, D + 1] = w_l[0]                          # w_l    (col D+1)
    slab[:D, D + 2] = w_u[0]                           # w_u    (col D+2)
    slab[0, D + 3] = float(b_u[0])                     # b_u
    slab[1, D + 3] = float(b_l[0])                     # b_l

    kernel_params = dict(gt=jnp.asarray(gt), slab=jnp.asarray(slab),
                         T=T, Tp=Tp, D=D, Hd=Hd)
    return ref_params, kernel_params


# ------------------------- float64 numpy reference ---------------------------
def model_forward_reference_np(x, p, seq_len):
    """Faithful port of the PyTorch forward (FFT path), in float64 numpy."""
    T = seq_len
    x = np.asarray(x, np.float64)
    u = np.maximum(x @ p["w_u"].T + p["b_u"], 0.0)                  # [B, T, 1]
    fft_u = np.fft.rfft(u.transpose(0, 2, 1), n=2 * T, axis=-1)     # [B, 1, T+1]
    fft_H = np.fft.rfft(p["H"], n=2 * T, axis=-1)                   # [K, T+1]
    temp = fft_u * fft_H[None]
    m = np.fft.irfft(temp, n=2 * T, axis=-1)[:, :, :T].transpose(0, 2, 1)
    input_h = np.concatenate([m, x], axis=-1)
    h = np.maximum(input_h @ p["W_h"].T + p["b_h"], 0.0)
    h_n = h[:, -1, :]
    logit = h_n @ p["w_l"].T + p["b_l"]
    return (1.0 / (1.0 + np.exp(-logit))).reshape(1)


# ----------------------------------- main ------------------------------------
if __name__ == "__main__":
    # Small-but-representative shapes (module defaults are seq_len=2000; batch
    # must be 1 and output_size 1 because of the final .view(1)).
    batch_size = 1
    input_size = 8
    hidden_size = 32
    memory_size = 32
    seq_len = 256
    theta = 512

    key = jax.random.PRNGKey(0)
    kx, kparam = jax.random.split(key)
    x = jax.random.normal(kx, (batch_size, seq_len, input_size), jnp.float32)

    ref_params, kernel_params = build_params(
        kparam, input_size, hidden_size, memory_size, seq_len, theta)

    out = jax.block_until_ready(model_forward_pallas(x, kernel_params))

    ref = model_forward_reference_np(np.asarray(x), ref_params, seq_len)
    assert out.shape == (1,)
    assert np.allclose(np.asarray(out, np.float64), ref, atol=5e-4, rtol=5e-4), (
        np.asarray(out), ref)

    print("KERNEL_OK")
</pallas_src>

<mosaic_0001>
module attributes {stable_mosaic.version = 11 : i64} {
  func.func @kernel(%arg0: memref<8x256xf32, #tpu.memory_space<vmem>>, %arg1: memref<32x256xf32, #tpu.memory_space<vmem>>, %arg2: memref<32x128xf32, #tpu.memory_space<vmem>>, %arg3: memref<1x1xf32, #tpu.memory_space<vmem>>) attributes {dimension_semantics = [], scalar_prefetch = 0 : i64, scratch_operands = 0 : i64, tpu.core_type = #tpu.core_type<tc>} {
    %c0 = arith.constant 0 : index
    %c0_0 = arith.constant 0 : index
    %0 = vector.load %arg0[%c0, %c0_0] : memref<8x256xf32, #tpu.memory_space<vmem>>, vector<8x256xf32>
    %c0_1 = arith.constant 0 : index
    %c10 = arith.constant 10 : index
    %1 = vector.load %arg2[%c0_1, %c10] : memref<32x128xf32, #tpu.memory_space<vmem>>, vector<8x1xf32>
    %c0_2 = arith.constant 0 : index
    %c11 = arith.constant 11 : index
    %2 = vector.load %arg2[%c0_2, %c11] : memref<32x128xf32, #tpu.memory_space<vmem>>, vector<1x1xf32>
    %3 = vector.broadcast %1 : vector<8x1xf32> to vector<8x256xf32>
    %4 = arith.mulf %0, %3 : vector<8x256xf32>
    %cst = arith.constant dense<0.000000e+00> : vector<256xf32>
    %5 = vector.multi_reduction <add>, %4, %cst [0] : vector<8x256xf32> to vector<256xf32>
    %6 = vector.shape_cast %5 : vector<256xf32> to vector<1x256xf32>
    %7 = vector.broadcast %2 : vector<1x1xf32> to vector<1x256xf32>
    %8 = arith.addf %6, %7 : vector<1x256xf32>
    %cst_3 = arith.constant 0.000000e+00 : f32
    %9 = vector.broadcast %cst_3 : f32 to vector<1x256xf32>
    %10 = arith.maximumf %8, %9 : vector<1x256xf32>
    %c0_4 = arith.constant 0 : index
    %c0_5 = arith.constant 0 : index
    %11 = vector.load %arg1[%c0_4, %c0_5] : memref<32x256xf32, #tpu.memory_space<vmem>>, vector<32x256xf32>
    %12 = vector.broadcast %10 : vector<1x256xf32> to vector<32x256xf32>
    %13 = arith.mulf %11, %12 : vector<32x256xf32>
    %cst_6 = arith.constant dense<0.000000e+00> : vector<32xf32>
    %14 = vector.multi_reduction <add>, %13, %cst_6 [1] : vector<32x256xf32> to vector<32xf32>
    %15 = vector.shape_cast %14 : vector<32xf32> to vector<32x1xf32>
    %c0_7 = arith.constant 0 : index
    %c0_8 = arith.constant 0 : index
    %16 = vector.load %arg2[%c0_7, %c0_8] : memref<32x128xf32, #tpu.memory_space<vmem>>, vector<32x1xf32>
    %c0_9 = arith.constant 0 : index
    %c255 = arith.constant 255 : index
    %17 = vector.load %arg0[%c0_9, %c255] : memref<8x256xf32, #tpu.memory_space<vmem>>, vector<1x1xf32>
    %18 = vector.broadcast %17 : vector<1x1xf32> to vector<32x1xf32>
    %19 = arith.mulf %16, %18 : vector<32x1xf32>
    %20 = arith.addf %15, %19 : vector<32x1xf32>
    %c0_10 = arith.constant 0 : index
    %c1 = arith.constant 1 : index
    %21 = vector.load %arg2[%c0_10, %c1] : memref<32x128xf32, #tpu.memory_space<vmem>>, vector<32x1xf32>
    %c1_11 = arith.constant 1 : index
    %c255_12 = arith.constant 255 : index
    %22 = vector.load %arg0[%c1_11, %c255_12] : memref<8x256xf32, #tpu.memory_space<vmem>>, vector<1x1xf32>
    %23 = vector.broadcast %22 : vector<1x1xf32> to vector<32x1xf32>
    %24 = arith.mulf %21, %23 : vector<32x1xf32>
    %25 = arith.addf %20, %24 : vector<32x1xf32>
    %c0_13 = arith.constant 0 : index
    %c2 = arith.constant 2 : index
    %26 = vector.load %arg2[%c0_13, %c2] : memref<32x128xf32, #tpu.memory_space<vmem>>, vector<32x1xf32>
    %c2_14 = arith.constant 2 : index
    %c255_15 = arith.constant 255 : index
    %27 = vector.load %arg0[%c2_14, %c255_15] : memref<8x256xf32, #tpu.memory_space<vmem>>, vector<1x1xf32>
    %28 = vector.broadcast %27 : vector<1x1xf32> to vector<32x1xf32>
    %29 = arith.mulf %26, %28 : vector<32x1xf32>
    %30 = arith.addf %25, %29 : vector<32x1xf32>
    %c0_16 = arith.constant 0 : index
    %c3 = arith.constant 3 : index
    %31 = vector.load %arg2[%c0_16, %c3] : memref<32x128xf32, #tpu.memory_space<vmem>>, vector<32x1xf32>
    %c3_17 = arith.constant 3 : index
    %c255_18 = arith.constant 255 : index
    %32 = vector.load %arg0[%c3_17, %c255_18] : memref<8x256xf32, #tpu.memory_space<vmem>>, vector<1x1xf32>
    %33 = vector.broadcast %32 : vector<1x1xf32> to vector<32x1xf32>
    %34 = arith.mulf %31, %33 : vector<32x1xf32>
    %35 = arith.addf %30, %34 : vector<32x1xf32>
    %c0_19 = arith.constant 0 : index
    %c4 = arith.constant 4 : index
    %36 = vector.load %arg2[%c0_19, %c4] : memref<32x128xf32, #tpu.memory_space<vmem>>, vector<32x1xf32>
    %c4_20 = arith.constant 4 : index
    %c255_21 = arith.constant 255 : index
    %37 = vector.load %arg0[%c4_20, %c255_21] : memref<8x256xf32, #tpu.memory_space<vmem>>, vector<1x1xf32>
    %38 = vector.broadcast %37 : vector<1x1xf32> to vector<32x1xf32>
    %39 = arith.mulf %36, %38 : vector<32x1xf32>
    %40 = arith.addf %35, %39 : vector<32x1xf32>
    %c0_22 = arith.constant 0 : index
    %c5 = arith.constant 5 : index
    %41 = vector.load %arg2[%c0_22, %c5] : memref<32x128xf32, #tpu.memory_space<vmem>>, vector<32x1xf32>
    %c5_23 = arith.constant 5 : index
    %c255_24 = arith.constant 255 : index
    %42 = vector.load %arg0[%c5_23, %c255_24] : memref<8x256xf32, #tpu.memory_space<vmem>>, vector<1x1xf32>
    %43 = vector.broadcast %42 : vector<1x1xf32> to vector<32x1xf32>
    %44 = arith.mulf %41, %43 : vector<32x1xf32>
    %45 = arith.addf %40, %44 : vector<32x1xf32>
    %c0_25 = arith.constant 0 : index
    %c6 = arith.constant 6 : index
    %46 = vector.load %arg2[%c0_25, %c6] : memref<32x128xf32, #tpu.memory_space<vmem>>, vector<32x1xf32>
    %c6_26 = arith.constant 6 : index
    %c255_27 = arith.constant 255 : index
    %47 = vector.load %arg0[%c6_26, %c255_27] : memref<8x256xf32, #tpu.memory_space<vmem>>, vector<1x1xf32>
    %48 = vector.broadcast %47 : vector<1x1xf32> to vector<32x1xf32>
    %49 = arith.mulf %46, %48 : vector<32x1xf32>
    %50 = arith.addf %45, %49 : vector<32x1xf32>
    %c0_28 = arith.constant 0 : index
    %c7 = arith.constant 7 : index
    %51 = vector.load %arg2[%c0_28, %c7] : memref<32x128xf32, #tpu.memory_space<vmem>>, vector<32x1xf32>
    %c7_29 = arith.constant 7 : index
    %c255_30 = arith.constant 255 : index
    %52 = vector.load %arg0[%c7_29, %c255_30] : memref<8x256xf32, #tpu.memory_space<vmem>>, vector<1x1xf32>
    %53 = vector.broadcast %52 : vector<1x1xf32> to vector<32x1xf32>
    %54 = arith.mulf %51, %53 : vector<32x1xf32>
    %55 = arith.addf %50, %54 : vector<32x1xf32>
    %c0_31 = arith.constant 0 : index
    %c8 = arith.constant 8 : index
    %56 = vector.load %arg2[%c0_31, %c8] : memref<32x128xf32, #tpu.memory_space<vmem>>, vector<32x1xf32>
    %57 = arith.addf %55, %56 : vector<32x1xf32>
    %cst_32 = arith.constant 0.000000e+00 : f32
    %58 = vector.broadcast %cst_32 : f32 to vector<32x1xf32>
    %59 = arith.maximumf %57, %58 : vector<32x1xf32>
    %c0_33 = arith.constant 0 : index
    %c9 = arith.constant 9 : index
    %60 = vector.load %arg2[%c0_33, %c9] : memref<32x128xf32, #tpu.memory_space<vmem>>, vector<32x1xf32>
    %61 = arith.mulf %59, %60 : vector<32x1xf32>
    %cst_34 = arith.constant dense<0.000000e+00> : vector<1xf32>
    %62 = vector.multi_reduction <add>, %61, %cst_34 [0] : vector<32x1xf32> to vector<1xf32>
    %63 = vector.shape_cast %62 : vector<1xf32> to vector<1x1xf32>
    %c1_35 = arith.constant 1 : index
    %c11_36 = arith.constant 11 : index
    %64 = vector.load %arg2[%c1_35, %c11_36] : memref<32x128xf32, #tpu.memory_space<vmem>>, vector<1x1xf32>
    %65 = arith.addf %63, %64 : vector<1x1xf32>
    %66 = math.absf %65 : vector<1x1xf32>
    %cst_37 = arith.constant 0.000000e+00 : f32
    %67 = vector.broadcast %cst_37 : f32 to vector<1x1xf32>
    %68 = arith.subf %67, %66 : vector<1x1xf32>
    %69 = math.exp %68 : vector<1x1xf32>
    %cst_38 = arith.constant 0.000000e+00 : f32
    %70 = vector.broadcast %cst_38 : f32 to vector<1x1xf32>
    %71 = arith.cmpf oge, %65, %70 : vector<1x1xf32>
    %cst_39 = arith.constant 1.000000e+00 : f32
    %72 = vector.broadcast %cst_39 : f32 to vector<1x1xf32>
    %73 = arith.addf %72, %69 : vector<1x1xf32>
    %cst_40 = arith.constant 1.000000e+00 : f32
    %74 = vector.broadcast %cst_40 : f32 to vector<1x1xf32>
    %75 = arith.divf %74, %73 : vector<1x1xf32>
    %cst_41 = arith.constant 1.000000e+00 : f32
    %76 = vector.broadcast %cst_41 : f32 to vector<1x1xf32>
    %77 = arith.addf %76, %69 : vector<1x1xf32>
    %78 = arith.divf %69, %77 : vector<1x1xf32>
    %79 = arith.select %71, %75, %78 : vector<1x1xi1>, vector<1x1xf32>
    %c0_42 = arith.constant 0 : index
    %c0_43 = arith.constant 0 : index
    %80 = vector.load %arg3[%c0_42, %c0_43] : memref<1x1xf32, #tpu.memory_space<vmem>>, vector<1x1xf32>
    tpu.vector_store %arg3[%c0_42, %c0_43], %79 {strides = array<i32>} : memref<1x1xf32, #tpu.memory_space<vmem>>, vector<1x1xf32>,
    return
  }
}

</mosaic_0001>

<bundles_post_ra>
// kernel: tpu_custom_call.1
= control target key start
LH: loop header
LB: loop body
LE: loop exit
PB: predicated region body
PF: predicated region fallthrough
CT: control target
= control target key end

     0   :  { %8 = vsyncpa [#allocation3], 0  ;;  %s714_s0 = inlined_call_operand.hbm [shape: f32[8,256], index: 0, kind: input, shape index: {}]   ;;  %s715_s1 = inlined_call_operand.hbm [shape: f32[32,256], index: 1, kind: input, shape index: {}]   ;;  %s716_s2 = inlined_call_operand.hbm [shape: f32[32,128], index: 2, kind: input, shape index: {}]   ;;  %s717_s3 = inlined_call_operand.hbm [shape: f32[1,1], index: 3, kind: output, shape index: {}]  }
   0x1   :  { %9 = vsyncpa [#allocation6], 0  ;;  %s26_s14 = sshll.u32 %s715_s1, 4  ;;  %s27_s14 = int_to_ptr.hbm [resolvable:$true] %s26_s14 }
   0x2   :  { %10 = vsyncpa [#allocation4], 0  ;;  %s580_s15 = smov [#allocation5]   ;;  %s16_s19 = sshll.u32 %s714_s0, 4  ;;  %s17_s19 = int_to_ptr.hbm [resolvable:$true] %s16_s19 }
   0x3   :  { %s28_s16 = sshll.u32 %s580_s15, 4  ;;  %s581_s20 = smov 256   ;;  %s29_s16 = int_to_ptr.vmem [resolvable:$true] %s28_s16 }
   0x4   :  { %s582_s21 = smov 16   ;;  %s583_s22 = smov [#allocation2]  }
   0x5   :  { %34 = dma.hbm_to_vmem [thread:$0]  %s27_s14, 1024, %s29_s16, [#allocation6], %s581_s20, %s581_s20, %s582_s21  }
   0x6   :  { %s18_s23 = sshll.u32 %s583_s22, 4  ;;  %s39_s26 = sshll.u32 %s716_s2, 4  ;;  %s19_s23 = int_to_ptr.vmem [resolvable:$true] %s18_s23  ;;  %s40_s26 = int_to_ptr.hbm [resolvable:$true] %s39_s26 }
   0x7   :  { %21 = dma.hbm_to_vmem [thread:$0]  %s17_s19, 256, %s19_s23, [#allocation3]  }
   0x8   :  { %s584_s1 = smov [#allocation7]   ;;  %s585_s28 = smov 128  }
   0x9   :  { %s41_s27 = sshll.u32 %s584_s1, 4  ;;  %s586_s29 = smov 8   ;;  %s42_s27 = int_to_ptr.vmem [resolvable:$true] %s41_s27 }
   0xa   :  { %47 = dma.hbm_to_vmem [thread:$0]  %s40_s26, 512, %s42_s27, [#allocation6], %s585_s28, %s585_s28, %s586_s29  }
   0xb   :  { %574 = dma.done.wait [#allocation3], 256  }
   0xc   :  { %575 = vsyncadd [#allocation3], 4294967040 }
   0xd   :  { %576 = dma.done.wait [#allocation6], 1536  }
   0xe   :  { %577 = vsyncadd [#allocation6], 4294965760  ;;  %v587_v0 = vmov 10   ;;  %v139_v1 = vld [vmem:[#allocation2 + $0x9] ss:$0 sm:$0xff]  ;;  %v637_v2 = vld [vmem:[#allocation7] sm:$0xff] }
   0xf   :  { %472 = vset.pattern.permute.xlu0 %v587_v0  ;;  %v168_v3 = vld [vmem:[#allocation2 + $0xa] ss:$0 sm:$0xff]  ;;  %s588_s0 = smov 2   ;;  %s589_s2 = smov 3   ;;  %v63_v4 = vld [vmem:[#allocation7] sm:$0x1] }
  0x10   :  { %141 = vrot.lane.b32.xlu1 %v139_v1, %s588_s0  ;;  %66 = vperm.xlu0 %472, %v637_v2   ;;  %v197_v5 = vld [vmem:[#allocation2 + $0xb] ss:$0 sm:$0xff]  ;;  %v590_v6 = vmov 11   ;;  %s591_s30 = smov 4   ;;  %v255_v7 = vld [vmem:[#allocation2 + $0xd] ss:$0 sm:$0xff] }
  0x11   :  { %170 = vrot.lane.b32.xlu2 %v168_v3, %s589_s2  ;;  %v226_v8 = vld [vmem:[#allocation2 + $0xc] ss:$0 sm:$0xff]  ;;  %s592_s4 = smov 6   ;;  %s593_s5 = smov 5   ;;  %v284_v9 = vld [vmem:[#allocation2 + $0xe] ss:$0 sm:$0xff] }
  0x12   :  { %v313_v10 = vld [vmem:[#allocation2 + $0xf] ss:$0 sm:$0xff]  ;;  %s594_s6 = smov 7   ;;  %v126_v11 = vld [vmem:[#allocation2 + $0x8] ss:$0 sm:$0xff]  ;;  %s595_s7 = smov 1  }
  0x13   :  { %s596_s8 = smov 126   ;;  %v643_v14 = vld [vmem:[#allocation7 + $0x10] sm:$0xff]  ;;  %v647_v17 = vld [vmem:[#allocation7 + $0x8] sm:$0xff]  ;;  %s597_s9 = smov 125   ;;  %v654_v25 = vld [vmem:[#allocation7 + $0x18] sm:$0xff]  ;;  %vm382_vm0 = vcmask 7168  }
  0x14   :  { %s598_s10 = smov 127   ;;  %s599_s11 = smov 123   ;;  %v60_v34 = vld [vmem:[#allocation2] sm:$0xff]  ;;  %v61_v35 = vld [vmem:[#allocation2 + $0x8] sm:$0xff]  ;;  %v96_v3 = vld [vmem:[#allocation5 + $0x20] sm:$0xff]  ;;  %vm425_vm5 = vcmask 0  }
  0x15   :  { %s600_s12 = smov 124   ;;  %s601_s13 = smov 122  }
  0x16   :  { %s602_s14 = smov 120   ;;  %s603_s15 = smov 119  }
  0x17   :  { %s604_s16 = smov 121   ;;  %s605_s17 = smov 117  }
  0x18   :  { %473 = vset.pattern.permute.xlu0 %v590_v6  ;;  %128 = vrot.lane.b32.xlu1 %v126_v11, %s595_s7  ;;  %s606_s18 = smov [#allocation8]   ;;  %s434_s22 = sshll.u32 %s717_s3, 4  ;;  %s435_s22 = int_to_ptr.hbm [resolvable:$true] %s434_s22 }
  0x19   :  { %85 = vperm.xlu0 %473, %v63_v4   ;;  %199 = vrot.lane.b32.xlu2 %v197_v5, %s591_s30  ;;  %v97_v4 = vld [vmem:[#allocation5 + $0x28] sm:$0xff]  ;;  %s432_s19 = sshll.u32 %s606_s18, 4  ;;  %s433_s19 = int_to_ptr.vmem [resolvable:$true] %s432_s19 }
  0x21   :  { %257 = vrot.lane.b32.xlu0 %v255_v7, %s592_s4  ;;  %228 = vrot.lane.b32.xlu2 %v226_v8, %s593_s5  ;;  %v92_v8 = vld [vmem:[#allocation5] sm:$0xff] }
  0x29   :  { %286 = vrot.lane.b32.xlu2 %v284_v9, %s594_s6  ;;  %315 = vrot.lane.b32.xlu0 %v313_v10, %s586_s29  ;;  %v93_v9 = vld [vmem:[#allocation5 + $0x8] sm:$0xff] }
  0x6b   :  { %v171_v12 = vpop.permute.xlu2 %170 }
  0x6c   :  { %v173_v13 = vmul.f32 %v171_v12, %v637_v2  ;;  %v175_v15 = vmul.f32 %v171_v12, %v643_v14  ;;  %v174_v24 = vmul.f32 %v171_v12, %v647_v17  ;;  %v176_v41 = vmul.f32 %v171_v12, %v654_v25 }
  0x6e   :  { %181 = vrot.lane.b32.xlu0 %v173_v13, %s596_s8  ;;  %v98_v13 = vld [vmem:[#allocation5 + $0x30] sm:$0xff] }
  0x73   :  { %v200_v16 = vpop.permute.xlu2 %199 }
  0x74   :  { %v203_v18 = vmul.f32 %v200_v16, %v647_v17  ;;  %v204_v21 = vmul.f32 %v200_v16, %v643_v14  ;;  %v205_v26 = vmul.f32 %v200_v16, %v654_v25  ;;  %v202_v30 = vmul.f32 %v200_v16, %v637_v2 }
  0x76   :  { %185 = vrot.lane.b32.xlu0 %v175_v15, %s596_s8  ;;  %v99_v15 = vld [vmem:[#allocation5 + $0x38] sm:$0xff] }
  0x7b   :  { %v229_v29 = vpop.permute.xlu2 %228 }
  0x7c   :  { %v232_v37 = vmul.f32 %v229_v29, %v647_v17  ;;  %v231_v47 = vmul.f32 %v229_v29, %v637_v2  ;;  %v233_v52 = vmul.f32 %v229_v29, %v643_v14  ;;  %v234_v58 = vmul.f32 %v229_v29, %v654_v25 }
  0x7e   :  { %212 = vrot.lane.b32.xlu0 %v203_v18, %s597_s9 }
  0x82   :  { %v142_v19 = vpop.permute.xlu1 %141  ;;  %v67_v20 = vpop.permute.xlu0 %66 }
  0x83   :  { %v146_v22 = vmul.f32 %v142_v19, %v643_v14  ;;  %v144_v23 = vmul.f32 %v142_v19, %v637_v2  ;;  %v145_v28 = vmul.f32 %v142_v19, %v647_v17  ;;  %v147_v32 = vmul.f32 %v142_v19, %v654_v25  ;;  %v666_v36 = vpop.permute.xlu2 %286 }
  0x84   :  { %v69_v38 = vmul.f32 %v67_v20, %v60_v34  ;;  %v70_v39 = vmul.f32 %v67_v20, %v61_v35  ;;  %v289_v40 = vmul.f32 %v666_v36, %v637_v2  ;;  %v290_v61 = vmul.f32 %v666_v36, %v647_v17 }
  0x85   :  { %156 = vrot.lane.b32.xlu2 %v146_v22, %s598_s10  ;;  %152 = vrot.lane.b32.xlu1 %v144_v23, %s598_s10  ;;  %v291_v19 = vmul.f32 %v666_v36, %v643_v14  ;;  %v95_v22 = vld [vmem:[#allocation5 + $0x18] sm:$0xff] }
  0x86   :  { %214 = vrot.lane.b32.xlu0 %v204_v21, %s597_s9  ;;  %v71_v42 = vrot.slane %v69_v38, 4  ;;  %v77_v43 = vrot.slane %v70_v39, 4  ;;  %v94_v21 = vld [vmem:[#allocation5 + $0x10] sm:$0xff] }
  0x88   :  { %v72_v45 = vadd.f32 %v71_v42, %v69_v38  ;;  %v78_v46 = vadd.f32 %v77_v43, %v70_v39 }
  0x8a   :  { %v73_v48 = vrot.slane %v72_v45, 2  ;;  %v79_v49 = vrot.slane %v78_v46, 2  ;;  %v129_v34 = vpop.permute.xlu1 %128 }
  0x8b   :  { %v86_v27 = vpop.permute.xlu0 %85 }
  0x8c   :  { %v74_v50 = vadd.f32 %v73_v48, %v72_v45  ;;  %v80_v51 = vadd.f32 %v79_v49, %v78_v46 }
  0x8d   :  { %183 = vrot.lane.b32.xlu2 %v174_v24, %s596_s8  ;;  %154 = vrot.lane.b32.xlu1 %v145_v28, %s598_s10 }
  0x8e   :  { %216 = vrot.lane.b32.xlu0 %v205_v26, %s597_s9  ;;  %v75_v54 = vrot.slane %v74_v50, 1  ;;  %v81_v55 = vrot.slane %v80_v51, 1  ;;  %v292_v26 = vmul.f32 %v666_v36, %v654_v25 }
  0x90   :  { %v76_v56 = vadd.f32 %v75_v54, %v74_v50  ;;  %v82_v57 = vadd.f32 %v81_v55, %v80_v51  ;;  %v131_v54 = vmul.f32 %v129_v34, %v637_v2 }
  0x92   :  { %v88_v59 = vadd.f32 %v86_v27, %v76_v56  ;;  %v89_v60 = vadd.f32 %v86_v27, %v82_v57 }
  0x93   :  { %v660_v31 = vpop.permute.xlu0 %257 }
  0x94   :  { %v261_v33 = vmul.f32 %v660_v31, %v647_v17  ;;  %v260_v44 = vmul.f32 %v660_v31, %v637_v2  ;;  %v262_v53 = vmul.f32 %v660_v31, %v643_v14  ;;  %v90_v62 = vmax.f32 %v88_v59, 0.0 }
  0x95   :  { %210 = vrot.lane.b32.xlu2 %v202_v30, %s597_s9  ;;  %158 = vrot.lane.b32.xlu1 %v147_v32, %s598_s10  ;;  %v91_v63 = vmax.f32 %v89_v60, 0.0  ;;  %v263_v28 = vmul.f32 %v660_v31, %v654_v25 }
  0x96   :  { %270 = vrot.lane.b32.xlu0 %v261_v33, %s599_s11  ;;  %v100_v0 = vperm.slane %v90_v62, 0  ;;  %v134_v62 = vmul.f32 %v129_v34, %v654_v25 }
  0x97   :  { %v101_v1 = vperm.slane %v91_v63, 0 }
  0x98   :  { %v106_v5 = vmul.f32 %v100_v0, %v96_v3  ;;  %v102_v10 = vmul.f32 %v100_v0, %v92_v8  ;;  %v108_v16 = vmul.f32 %v100_v0, %v98_v13  ;;  %v104_v23 = vmul.f32 %v100_v0, %v94_v21 }
  0x99   :  { %v107_v6 = vmul.f32 %v101_v1, %v97_v4  ;;  %v103_v11 = vmul.f32 %v101_v1, %v93_v9  ;;  %v109_v18 = vmul.f32 %v101_v1, %v99_v15  ;;  %v105_v24 = vmul.f32 %v101_v1, %v95_v22 }
  0x9a   :  { %v133_v13 = vmul.f32 %v129_v34, %v643_v14 }
  0x9b   :  { %v116_v7 = vadd.f32 %v107_v6, %v106_v5  ;;  %v110_v12 = vadd.f32 %v103_v11, %v102_v10  ;;  %v119_v20 = vadd.f32 %v109_v18, %v108_v16  ;;  %v113_v27 = vadd.f32 %v105_v24, %v104_v23  ;;  %v316_v29 = vpop.permute.xlu0 %315 }
  0x9c   :  { %v318_v30 = vmul.f32 %v316_v29, %v637_v2  ;;  %v319_v32 = vmul.f32 %v316_v29, %v647_v17  ;;  %v320_v33 = vmul.f32 %v316_v29, %v643_v14  ;;  %v321_v35 = vmul.f32 %v316_v29, %v654_v25 }
  0x9d   :  { %187 = vrot.lane.b32.xlu2 %v176_v41, %s596_s8  ;;  %241 = vrot.lane.b32.xlu1 %v232_v37, %s600_s12  ;;  %v132_v5 = vmul.f32 %v129_v34, %v647_v17 }
  0x9e   :  { %297 = vrot.lane.b32.xlu0 %v289_v40, %s601_s13  ;;  %v396_v40 = vld [vmem:[#allocation7 + $0x1] sm:$0x1] }
  0xa5   :  { %239 = vrot.lane.b32.xlu2 %v231_v47, %s600_s12  ;;  %268 = vrot.lane.b32.xlu1 %v260_v44, %s599_s11 }
  0xad   :  { %243 = vrot.lane.b32.xlu2 %v233_v52, %s600_s12  ;;  %272 = vrot.lane.b32.xlu1 %v262_v53, %s599_s11 }
  0xb5   :  { %245 = vrot.lane.b32.xlu2 %v234_v58, %s600_s12 }
  0xbd   :  { %299 = vrot.lane.b32.xlu2 %v290_v61, %s601_s13 }
  0xc8   :  { %117 = vadd.xlane.f32.xlu0 %v116_v7 }
  0xd7   :  { %111 = vadd.xlane.f32.xlu1 %v110_v12 }
  0xdc   :  { %301 = vrot.lane.b32.xlu0 %v291_v19, %s601_s13 }
  0xdf   :  { %120 = vadd.xlane.f32.xlu1 %v119_v20  ;;  %v157_v31 = vpop.permute.xlu2 %156 }
  0xe0   :  { %v182_v39 = vpop.permute.xlu0 %181 }
  0xe4   :  { %303 = vrot.lane.b32.xlu0 %v292_v26, %s601_s13 }
  0xe6   :  { %114 = vadd.xlane.f32.xlu2 %v113_v27 }
  0xe7   :  { %v184_v37 = vpop.permute.xlu2 %183 }
  0xe8   :  { %v186_v43 = vpop.permute.xlu0 %185 }
  0xec   :  { %348 = vrot.lane.b32.xlu0 %v647_v17, %s602_s14 }
  0xef   :  { %v211_v41 = vpop.permute.xlu2 %210 }
  0xf0   :  { %v213_v46 = vpop.permute.xlu0 %212 }
  0xf4   :  { %352 = vrot.lane.b32.xlu0 %v654_v25, %s602_s14 }
  0xf7   :  { %v153_v36 = vpop.permute.xlu1 %152  ;;  %v188_v44 = vpop.permute.xlu2 %187 }
  0xf8   :  { %274 = vrot.lane.b32.xlu1 %v263_v28, %s599_s11  ;;  %v215_v49 = vpop.permute.xlu0 %214 }
  0xfc   :  { %370 = vrot.lane.b32.xlu0 %v643_v14, %s603_s15 }
  0xfe   :  { %326 = vrot.lane.b32.xlu2 %v318_v30, %s604_s16 }
  0xff   :  { %v155_v38 = vpop.permute.xlu1 %154  ;;  %v240_v47 = vpop.permute.xlu2 %239 }
 0x100   :  { %328 = vrot.lane.b32.xlu1 %v319_v32, %s604_s16  ;;  %v217_v52 = vpop.permute.xlu0 %216 }
 0x106   :  { %330 = vrot.lane.b32.xlu2 %v320_v33, %s604_s16 }
 0x107   :  { %v159_v42 = vpop.permute.xlu1 %158  ;;  %v244_v50 = vpop.permute.xlu2 %243 }
 0x108   :  { %346 = vrot.lane.b32.xlu1 %v637_v2, %s602_s14  ;;  %v271_v57 = vpop.permute.xlu0 %270 }
 0x10e   :  { %332 = vrot.lane.b32.xlu2 %v321_v35, %s604_s16 }
 0x10f   :  { %v242_v45 = vpop.permute.xlu1 %241  ;;  %v246_v53 = vpop.permute.xlu2 %245 }
 0x110   :  { %350 = vrot.lane.b32.xlu1 %v643_v14, %s602_s14  ;;  %v298_v1 = vpop.permute.xlu0 %297 }
 0x116   :  { %366 = vrot.lane.b32.xlu2 %v637_v2, %s603_s15 }
 0x117   :  { %v269_v48 = vpop.permute.xlu1 %268  ;;  %v300_v60 = vpop.permute.xlu2 %299 }
 0x118   :  { %368 = vrot.lane.b32.xlu1 %v647_v17, %s603_s15 }
 0x11e   :  { %372 = vrot.lane.b32.xlu2 %v654_v25, %s603_s15 }
 0x11f   :  { %v273_v51 = vpop.permute.xlu1 %272 }
 0x120   :  { %398 = vrot.lane.b32.xlu1 %v396_v40, %s605_s17 }
 0x13b   :  { %v118_v8 = vpop.xlane.xlu0 %117 }
 0x13c   :  { %v137_v15 = vadd.f32 %v133_v13, %v118_v8 }
 0x13e   :  { %v166_v18 = vadd.f32 %v157_v31, %v137_v15 }
 0x140   :  { %v195_v20 = vadd.f32 %v186_v43, %v166_v18 }
 0x142   :  { %v224_v22 = vadd.f32 %v215_v49, %v195_v20 }
 0x144   :  { %v253_v28 = vadd.f32 %v244_v50, %v224_v22 }
 0x146   :  { %v282_v35 = vadd.f32 %v273_v51, %v253_v28 }
 0x14a   :  { %v112_v55 = vpop.xlane.xlu1 %111 }
 0x14b   :  { %v135_v56 = vadd.f32 %v131_v54, %v112_v55 }
 0x14d   :  { %v164_v58 = vadd.f32 %v153_v36, %v135_v56 }
 0x14e   :  { %v302_v12 = vpop.permute.xlu0 %301 }
 0x14f   :  { %v193_v59 = vadd.f32 %v182_v39, %v164_v58  ;;  %v311_v36 = vadd.f32 %v302_v12, %v282_v35 }
 0x151   :  { %v222_v61 = vadd.f32 %v211_v41, %v193_v59 }
 0x152   :  { %v121_v63 = vpop.xlane.xlu1 %120 }
 0x153   :  { %v138_v0 = vadd.f32 %v134_v62, %v121_v63  ;;  %v251_v23 = vadd.f32 %v240_v47, %v222_v61 }
 0x155   :  { %v167_v3 = vadd.f32 %v159_v42, %v138_v0  ;;  %v280_v29 = vadd.f32 %v269_v48, %v251_v23 }
 0x156   :  { %v304_v19 = vpop.permute.xlu0 %303 }
 0x157   :  { %v196_v4 = vadd.f32 %v188_v44, %v167_v3  ;;  %v309_v14 = vadd.f32 %v298_v1, %v280_v29 }
 0x159   :  { %v115_v6 = vpop.xlane.xlu2 %114  ;;  %v225_v26 = vadd.f32 %v217_v52, %v196_v4 }
 0x15a   :  { %v136_v7 = vadd.f32 %v132_v5, %v115_v6 }
 0x15b   :  { %v254_v32 = vadd.f32 %v246_v53, %v225_v26 }
 0x15c   :  { %v165_v2 = vadd.f32 %v155_v38, %v136_v7 }
 0x15e   :  { %v194_v9 = vadd.f32 %v184_v37, %v165_v2  ;;  %v349_v17 = vpop.permute.xlu0 %348 }
 0x160   :  { %v223_v10 = vadd.f32 %v213_v46, %v194_v9 }
 0x161   :  { %v327_v11 = vpop.permute.xlu2 %326 }
 0x162   :  { %v252_v27 = vadd.f32 %v242_v45, %v223_v10  ;;  %v338_v37 = vadd.f32 %v327_v11, %v309_v14 }
 0x164   :  { %v281_v33 = vadd.f32 %v271_v57, %v252_v27 }
 0x166   :  { %v310_v31 = vadd.f32 %v300_v60, %v281_v33  ;;  %v353_v38 = vpop.permute.xlu0 %352 }
 0x169   :  { %v331_v25 = vpop.permute.xlu2 %330 }
 0x16a   :  { %v275_v16 = vpop.permute.xlu1 %274  ;;  %v340_v40 = vadd.f32 %v331_v25, %v311_v36 }
 0x16b   :  { %v283_v34 = vadd.f32 %v275_v16, %v254_v32 }
 0x16d   :  { %v312_v41 = vadd.f32 %v304_v19, %v283_v34 }
 0x16e   :  { %v371_v52 = vpop.permute.xlu0 %370 }
 0x171   :  { %v333_v24 = vpop.permute.xlu2 %332 }
 0x172   :  { %v329_v21 = vpop.permute.xlu1 %328  ;;  %v341_v46 = vadd.f32 %v333_v24, %v312_v41 }
 0x173   :  { %v339_v42 = vadd.f32 %v329_v21, %v310_v31 }
 0x174   :  { %v361_v49 = vadd.f32 %v353_v38, %v341_v46 }
 0x175   :  { %v359_v47 = vadd.f32 %v349_v17, %v339_v42 }
 0x176   :  { %v365_v56 = vmax.f32 %v361_v49, 0.0 }
 0x177   :  { %v363_v53 = vmax.f32 %v359_v47, 0.0 }
 0x179   :  { %v367_v39 = vpop.permute.xlu2 %366 }
 0x17a   :  { %v347_v30 = vpop.permute.xlu1 %346 }
 0x17b   :  { %v358_v43 = vadd.f32 %v347_v30, %v338_v37 }
 0x17d   :  { %v362_v48 = vmax.f32 %v358_v43, 0.0 }
 0x17f   :  { %v378_v51 = vmul.f32 %v367_v39, %v362_v48 }
 0x181   :  { %v373_v54 = vpop.permute.xlu2 %372  ;;  %v383_v60 = vsel %vm382_vm0, %v378_v51, 0.0 }
 0x182   :  { %v351_v44 = vpop.permute.xlu1 %350  ;;  %v381_v59 = vmul.f32 %v373_v54, %v365_v56 }
 0x183   :  { %v360_v45 = vadd.f32 %v351_v44, %v340_v40 }
 0x184   :  { %v388_v1 = vsel %vm382_vm0, %v381_v59, 0.0 }
 0x185   :  { %v364_v50 = vmax.f32 %v360_v45, 0.0 }
 0x187   :  { %v380_v57 = vmul.f32 %v371_v52, %v364_v50 }
 0x189   :  { %v386_v63 = vsel %vm382_vm0, %v380_v57, 0.0 }
 0x18a   :  { %v369_v55 = vpop.permute.xlu1 %368 }
 0x18b   :  { %v379_v58 = vmul.f32 %v369_v55, %v363_v53 }
 0x18d   :  { %v384_v61 = vsel %vm382_vm0, %v379_v58, 0.0 }
 0x18e   :  { %v385_v62 = vadd.f32 %v384_v61, %v383_v60 }
 0x190   :  { %v387_v0 = vadd.f32 %v386_v63, %v385_v62 }
 0x192   :  { %v389_v3 = vadd.f32 %v388_v1, %v387_v0  ;;  %v399_v2 = vpop.permute.xlu1 %398 }
 0x194   :  { %v390_v4 = vrot.slane %v389_v3, 4 }
 0x196   :  { %v391_v5 = vadd.f32 %v390_v4, %v389_v3 }
 0x198   :  { %v392_v6 = vrot.slane %v391_v5, 2 }
 0x19a   :  { %v393_v7 = vadd.f32 %v392_v6, %v391_v5 }
 0x19c   :  { %v394_v8 = vrot.slane %v393_v7, 1 }
 0x19e   :  { %v395_v9 = vadd.f32 %v394_v8, %v393_v7 }
 0x1a0   :  { %v401_v10 = vadd.f32 %v399_v2, %v395_v9 }
 0x1a2   :  { %v402_v11 = vand.u32 2147483647, %v401_v10  ;;  %vm406_vm6 = vcmp.ge.f32.partialorder %v401_v10, 0.0 }
 0x1a4   :  { %v403_v12 = vsub.f32 0.0, %v402_v11 }
 0x1a6   :  { %v404_v13 = vmul.f32 1.442695, %v403_v12 }
 0x1a8   :  { %474 = vpow2.f32 %v404_v13 }
 0x1ae   :  { %v475_v15 = vpop.eup %474 }
 0x1af   :  { %v407_v16 = vadd.f32 1.0, %v475_v15 }
 0x1b1   :  { %476 = vrcp.f32 %v407_v16  ;;  %v419_v20 = vand.u32 2147483648, %v407_v16  ;;  %v417_v22 = vand.u32 2147483647, %v407_v16  ;;  %vm413_vm2 = vweird.f32 %v407_v16 }
 0x1b3   :  { %v420_v17 = vor.u32 1.1754944e-38, %v419_v20  ;;  %vm418_vm4 = vcmp.eq.f32.partialorder %v417_v22, 8.507059e+37 }
 0x1b7   :  { %v477_v25 = vpop.eup %476 }
 0x1b8   :  { %v409_v18 = vmul.f32 %v477_v25, %v407_v16  ;;  %vm414_vm1 = vweird.f32 %v477_v25 }
 0x1b9   :  { %vm415_vm3 = vmor %vm413_vm2, %vm414_vm1 }
 0x1ba   :  { %v410_v19 = vsub.f32 1.0, %v409_v18 }
 0x1bc   :  { %v411_v21 = vmul.f32 %v477_v25, %v410_v19 }
 0x1be   :  { %v412_v23 = vadd.f32 %v477_v25, %v411_v21 }
 0x1c0   :  { %v416_v24 = vsel %vm415_vm3, %v477_v25, %v412_v23 }
 0x1c1   :  { %v421_v26 = vsel %vm418_vm4, %v420_v17, %v416_v24 }
 0x1c2   :  { %v423_v27 = vmul.f32 %v475_v15, %v421_v26 }
 0x1c4   :  { %v424_v28 = vsel %vm406_vm6, %v421_v26, %v423_v27 }
 0x1c5   :  { %426 = vst.msk [vmem:[#allocation8] sm:$0x1] %vm425_vm5, %v424_v28 }
 0x1c6   :  { %437 = dma.vmem_to_hbm [thread:$0]  %s433_s19, 16, %s435_s22, [#allocation4]  }
 0x1c7   :  { %578 = dma.done.wait [#allocation4], 16  }
 0x1c8   :  { %579 = vsyncadd [#allocation4], 4294967280 }
 0x1c9   :  { %442 = vsyncpa [#allocation3], 1 }
 0x1ca   :  { %443 = vsyncpa [#allocation6], 1 }
 0x1cb   :  { %444 = vsyncpa [#allocation4], 1 }

</bundles_post_ra>
